<compile_context>
chip_gen: v6e
topology: v6e:2x2x1
jax: 0.10.0
libtpu: 0.0.40
codegen_flags: <defaults>
</compile_context>

<pallas_src>
import jax
import jax.numpy as jnp
from jax.experimental import pallas as pl
from jax.experimental.pallas import tpu as pltpu


_LANE = 128
_CH_TILE = 256            # MXU-native tile on v6e/v7x; 2x2 MXU tiles on v5e.
_VPU_MAX_CIN = 8          # VPU fused-madd vs MXU crossover (safe v5e..v7x).
_VMEM_BUDGET = 12 << 20   # double-buffered working-set budget; fits v5e's
                          # 16 MiB scoped default (v6e/v7x default is 32 MiB).


def _block_project(w_ref, x_ref):
    """(t_co, t_ci) x (t_ci, t_hw) -> (t_co, t_hw) partial product in f32."""
    t_co, t_ci = w_ref.shape
    if t_ci <= _VPU_MAX_CIN:
        # Tiny contraction: t_ci fused broadcast multiply-adds on the VPU.
        # At this channel count the kernel is HBM-bound on every generation.
        w = w_ref[...].astype(jnp.float32)
        x = x_ref[...].astype(jnp.float32)
        acc = w[:, 0:1] * x[0:1, :]
        for c in range(1, t_ci):
            acc = acc + w[:, c : c + 1] * x[c : c + 1, :]
        return acc
    # Larger channel counts: MXU.  Precision pinned so results match the
    # exact-f32 VPU branch across the crossover.
    return jnp.dot(
        w_ref[...],
        x_ref[...],
        preferred_element_type=jnp.float32,
        precision=jax.lax.Precision.HIGHEST,
    )


def _proj_kernel_direct(w_ref, x_ref, o_ref):
    # Single reduction step: write straight to the output block.
    o_ref[...] = _block_project(w_ref, x_ref).astype(o_ref.dtype)


def _proj_kernel_acc(w_ref, x_ref, o_ref, acc_ref):
    # Reduction over C_in tiles (last grid axis): f32 accumulator, init/fin.
    k = pl.program_id(3)

    @pl.when(k == 0)
    def _():
        acc_ref[...] = jnp.zeros_like(acc_ref)

    acc_ref[...] += _block_project(w_ref, x_ref)

    @pl.when(k == pl.num_programs(3) - 1)
    def _():
        o_ref[...] = acc_ref[...].astype(o_ref.dtype)


def projector_block(x_nchw, weight, *, vmem_budget_bytes=_VMEM_BUDGET,
                    min_pallas_bytes=0):
    """1x1 conv (no bias).  NCHW in / NCHW out.

    x_nchw: (N, C_in, H, W)
    weight: (C_out, C_in) or Conv2d-shaped (C_out, C_in, 1, 1)
    """
    if weight.ndim == 4:
        weight = weight.reshape(weight.shape[0], weight.shape[1])
    N, C_in, H, W = x_nchw.shape
    C_out = weight.shape[0]
    HW = H * W
    itemsize = jnp.dtype(x_nchw.dtype).itemsize

    # HBM traffic of the op (reads + writes + weight).
    traffic = itemsize * (N * HW * (C_in + C_out)) + weight.size * itemsize

    # Optional size-based dispatch: below a few MiB of traffic the fixed
    # per-step Pallas overhead dominates and plain XLA fusion wins.
    if traffic < min_pallas_bytes:
        return jnp.einsum(
            "oc,nchw->nohw", weight, x_nchw,
            precision=jax.lax.Precision.HIGHEST,
        ).astype(x_nchw.dtype)

    x3 = x_nchw.reshape(N, C_in, HW)

    # ---- channel tiling --------------------------------------------------
    t_co = C_out if C_out <= _CH_TILE else _CH_TILE
    grid_co = pl.cdiv(C_out, t_co)
    if C_in > _CH_TILE and C_in % _CH_TILE == 0:
        t_ci = _CH_TILE
    else:
        # TODO(synk): for large non-multiple-of-256 C_in, pick a divisor tile.
        t_ci = C_in
    grid_ci = C_in // t_ci
    use_acc = grid_ci > 1

    # ---- VMEM-budgeted pixel tile ----------------------------------------
    w_buf_bytes = 2 * t_co * t_ci * itemsize            # double-buffered W
    budget = max(vmem_budget_bytes - w_buf_bytes, 1 << 20)
    per_px = 2 * (t_ci + t_co) * itemsize                # dbl-buffered in+out
    if use_acc:
        per_px += t_co * 4                               # f32 accumulator
    max_px = max(_LANE, (budget // per_px) // _LANE * _LANE)

    if HW <= max_px:
        t_hw = HW                        # one block, full extent (legal)
    else:
        steps = pl.cdiv(HW, max_px)      # balanced so the tail barely overshoots
        t_hw = pl.cdiv(pl.cdiv(HW, steps), _LANE) * _LANE
    grid_hw = pl.cdiv(HW, t_hw)

    working = (2 * (t_ci + t_co) * t_hw + 2 * t_co * t_ci) * itemsize
    if use_acc:
        working += t_co * t_hw * 4
    vmem_limit = int(min(max(working * 3 // 2 + (2 << 20), 16 << 20), 32 << 20))

    cost = pl.CostEstimate(
        flops=2 * N * C_out * C_in * HW,
        transcendentals=0,
        bytes_accessed=traffic,
    )

    if not use_acc:
        grid_spec = pltpu.PrefetchScalarGridSpec(
            num_scalar_prefetch=0,
            grid=(N, grid_co, grid_hw),
            in_specs=[
                # Weight tile, constant across batch/pixel axes.
                pl.BlockSpec((t_co, C_in), lambda n, o, j: (o, 0)),
                # Lane-dense input tile; batch dim squeezed out.
                pl.BlockSpec((None, C_in, t_hw), lambda n, o, j: (n, 0, j)),
            ],
            out_specs=pl.BlockSpec((None, t_co, t_hw),
                                   lambda n, o, j: (n, o, j)),
        )
        kernel = _proj_kernel_direct
        semantics = ("parallel", "parallel", "parallel")
    else:
        grid_spec = pltpu.PrefetchScalarGridSpec(
            num_scalar_prefetch=0,
            grid=(N, grid_co, grid_hw, grid_ci),
            in_specs=[
                pl.BlockSpec((t_co, t_ci), lambda n, o, j, k: (o, k)),
                pl.BlockSpec((None, t_ci, t_hw), lambda n, o, j, k: (n, k, j)),
            ],
            out_specs=pl.BlockSpec((None, t_co, t_hw),
                                   lambda n, o, j, k: (n, o, j)),
            scratch_shapes=[pltpu.VMEM((t_co, t_hw), jnp.float32)],
        )
        kernel = _proj_kernel_acc
        semantics = ("parallel", "parallel", "parallel", "arbitrary")

    out3 = pl.pallas_call(
        kernel,
        out_shape=jax.ShapeDtypeStruct((N, C_out, HW), x_nchw.dtype),
        grid_spec=grid_spec,
        compiler_params=pltpu.CompilerParams(
            dimension_semantics=semantics,
            vmem_limit_bytes=vmem_limit,
        ),
        cost_estimate=cost,
    )(weight, x3)

    return out3.reshape(N, C_out, H, W)


if __name__ == "__main__":
    key = jax.random.PRNGKey(0)
    kx, kw, kx2, kw2 = jax.random.split(key, 4)

    # --- Shapes implied by the module: ProjectorBlock(4, 8) on NCHW input.
    N, C_in, C_out, H, W = 2, 4, 8, 16, 16
    x = jax.random.normal(kx, (N, C_in, H, W), dtype=jnp.float32)
    bound = 1.0 / (C_in ** 0.5)
    weight = jax.random.uniform(kw, (C_out, C_in), dtype=jnp.float32,
                                minval=-bound, maxval=bound)

    out = jax.block_until_ready(projector_block(x, weight))
    ref = jnp.einsum("oc,nchw->nohw", weight, x,
                     precision=jax.lax.Precision.HIGHEST)
    assert out.shape == (N, C_out, H, W)
    assert jnp.allclose(out, ref, atol=1e-5, rtol=1e-5)

    # --- Secondary check: wide channels -> MXU + C_in-tiled accumulator path,
    #     plus a ragged (non-multiple-of-128) pixel count exercising the
    #     partial-block tail handling (no pad / no slice).
    N2, C_in2, C_out2, H2, W2 = 1, 512, 256, 50, 50
    x2 = jax.random.normal(kx2, (N2, C_in2, H2, W2), dtype=jnp.float32)
    b2 = 1.0 / (C_in2 ** 0.5)
    w2 = jax.random.uniform(kw2, (C_out2, C_in2), dtype=jnp.float32,
                            minval=-b2, maxval=b2)
    out2 = jax.block_until_ready(projector_block(x2, w2))
    ref2 = jnp.einsum("oc,nchw->nohw", w2, x2,
                      precision=jax.lax.Precision.HIGHEST)
    assert out2.shape == (N2, C_out2, H2, W2)
    assert jnp.allclose(out2, ref2, atol=1e-4, rtol=1e-4)

    print("KERNEL_OK")
</pallas_src>

<mosaic_0001>
module attributes {stable_mosaic.version = 11 : i64} {
  func.func @_proj_kernel_direct(%arg0: i32, %arg1: i32, %arg2: i32, %arg3: memref<8x4xf32, #tpu.memory_space<vmem>>, %arg4: memref<1x4x256xf32, #tpu.memory_space<vmem>>, %arg5: memref<1x8x256xf32, #tpu.memory_space<vmem>>) attributes {dimension_semantics = [#tpu.dimension_semantics<parallel>, #tpu.dimension_semantics<parallel>, #tpu.dimension_semantics<parallel>], iteration_bounds = array<i64: 2, 1, 1>, scalar_prefetch = 0 : i64, scratch_operands = 0 : i64, tpu.core_type = #tpu.core_type<tc>, window_params = [{transform_indices = @transform_0, window_bounds = array<i64: 8, 4>}, {transform_indices = @transform_1, window_bounds = array<i64: 1, 4, 256>}, {transform_indices = @transform_2, window_bounds = array<i64: 1, 8, 256>}]} {
    %c0 = arith.constant 0 : index
    %c0_0 = arith.constant 0 : index
    %0 = vector.load %arg3[%c0, %c0_0] : memref<8x4xf32, #tpu.memory_space<vmem>>, vector<8x4xf32>
    %c0_1 = arith.constant 0 : index
    %c0_2 = arith.constant 0 : index
    %c0_3 = arith.constant 0 : index
    %1 = vector.load %arg4[%c0_1, %c0_2, %c0_3] : memref<1x4x256xf32, #tpu.memory_space<vmem>>, vector<1x4x256xf32>
    %2 = vector.shape_cast %1 : vector<1x4x256xf32> to vector<4x256xf32>
    %3 = vector.extract_strided_slice %0 {offsets = [0, 0], sizes = [8, 1], strides = [1, 1]} : vector<8x4xf32> to vector<8x1xf32>
    %4 = vector.extract_strided_slice %2 {offsets = [0, 0], sizes = [1, 256], strides = [1, 1]} : vector<4x256xf32> to vector<1x256xf32>
    %5 = vector.broadcast %3 : vector<8x1xf32> to vector<8x256xf32>
    %6 = vector.broadcast %4 : vector<1x256xf32> to vector<8x256xf32>
    %7 = arith.mulf %5, %6 : vector<8x256xf32>
    %8 = vector.extract_strided_slice %0 {offsets = [0, 1], sizes = [8, 1], strides = [1, 1]} : vector<8x4xf32> to vector<8x1xf32>
    %9 = vector.extract_strided_slice %2 {offsets = [1, 0], sizes = [1, 256], strides = [1, 1]} : vector<4x256xf32> to vector<1x256xf32>
    %10 = vector.broadcast %8 : vector<8x1xf32> to vector<8x256xf32>
    %11 = vector.broadcast %9 : vector<1x256xf32> to vector<8x256xf32>
    %12 = arith.mulf %10, %11 : vector<8x256xf32>
    %13 = arith.addf %7, %12 : vector<8x256xf32>
    %14 = vector.extract_strided_slice %0 {offsets = [0, 2], sizes = [8, 1], strides = [1, 1]} : vector<8x4xf32> to vector<8x1xf32>
    %15 = vector.extract_strided_slice %2 {offsets = [2, 0], sizes = [1, 256], strides = [1, 1]} : vector<4x256xf32> to vector<1x256xf32>
    %16 = vector.broadcast %14 : vector<8x1xf32> to vector<8x256xf32>
    %17 = vector.broadcast %15 : vector<1x256xf32> to vector<8x256xf32>
    %18 = arith.mulf %16, %17 : vector<8x256xf32>
    %19 = arith.addf %13, %18 : vector<8x256xf32>
    %20 = vector.extract_strided_slice %0 {offsets = [0, 3], sizes = [8, 1], strides = [1, 1]} : vector<8x4xf32> to vector<8x1xf32>
    %21 = vector.extract_strided_slice %2 {offsets = [3, 0], sizes = [1, 256], strides = [1, 1]} : vector<4x256xf32> to vector<1x256xf32>
    %22 = vector.broadcast %20 : vector<8x1xf32> to vector<8x256xf32>
    %23 = vector.broadcast %21 : vector<1x256xf32> to vector<8x256xf32>
    %24 = arith.mulf %22, %23 : vector<8x256xf32>
    %25 = arith.addf %19, %24 : vector<8x256xf32>
    %c0_4 = arith.constant 0 : index
    %c0_5 = arith.constant 0 : index
    %c0_6 = arith.constant 0 : index
    %26 = vector.load %arg5[%c0_4, %c0_5, %c0_6] : memref<1x8x256xf32, #tpu.memory_space<vmem>>, vector<1x8x256xf32>
    %27 = vector.shape_cast %26 : vector<1x8x256xf32> to vector<8x256xf32>
    %28 = vector.shape_cast %25 : vector<8x256xf32> to vector<1x8x256xf32>
    tpu.vector_store %arg5[%c0_4, %c0_5, %c0_6], %28 {strides = array<i32>} : memref<1x8x256xf32, #tpu.memory_space<vmem>>, vector<1x8x256xf32>,
    return
  }
  func.func @transform_0(%arg0: i32, %arg1: i32, %arg2: i32) -> (i32, i32) {
    %c0_i32 = arith.constant 0 : i32
    %c0_i32_0 = arith.constant 0 : i32
    return %arg1, %c0_i32 : i32, i32
  }
  func.func @transform_1(%arg0: i32, %arg1: i32, %arg2: i32) -> (i32, i32, i32) {
    %c0_i32 = arith.constant 0 : i32
    %c0_i32_0 = arith.constant 0 : i32
    return %arg0, %c0_i32, %arg2 : i32, i32, i32
  }
  func.func @transform_2(%arg0: i32, %arg1: i32, %arg2: i32) -> (i32, i32, i32) {
    %c0_i32 = arith.constant 0 : i32
    return %arg0, %arg1, %arg2 : i32, i32, i32
  }
}

</mosaic_0001>

<bundles_post_ra>
// kernel: tpu_custom_call.1
= control target key start
LH: loop header
LB: loop body
LE: loop exit
PB: predicated region body
PF: predicated region fallthrough
CT: control target
= control target key end

     0   :  { %7 = vsyncpa [#allocation3], 0  ;;  %s801_s0 = inlined_call_operand.vmem [shape: f32[8,4], index: 0, kind: input, shape index: {}]   ;;  %s802_s1 = inlined_call_operand.hbm [shape: f32[2,4,256], index: 1, kind: input, shape index: {}]   ;;  %s803_s2 = inlined_call_operand.hbm [shape: f32[2,8,256], index: 2, kind: output, shape index: {}]  }
   0x1   :  { %9 = vsyncpa [#allocation3 + $0x1], 0 }
   0x2   :  { %10 = vsyncpa [#allocation4], 0 }
   0x3   :  { %12 = vsyncpa [#allocation4 + $0x1], 0  ;;  %s657_s9 = smov 0   ;;  %s659_s10 = smov 0  }
   0x4   :  { %s661_s11 = smov 0   ;;  %s663_s12 = smov 0  }
   0x5   :  { %s665_s13 = smov 0   ;;  %s667_s14 = smov 0  }
   0x6 LB: > { %s437_s15 = sadd.s32 4294967295, %s634_s14   ;;  %s438_s16 = sadd.s32 4294967294, %s634_s14   ;;  %s634_s14 = sphi %s667_s14, %s18_s14   ;;  %s630_s13 = sphi %s665_s13, %s815_s13   ;;  %s626_s12 = sphi %s663_s12, %s814_s12   ;;  %s622_s11 = sphi %s661_s11, %s813_s11   ;;  %s618_s10 = sphi %s659_s10, %s812_s10   ;;  %s614_s9 = sphi %s657_s9, %s811_s9  }
   0x7   : > { %s37_s17 = sadd.s32 1, %s630_s13  ;;  %s72_s18 = sadd.s32 1, %s622_s11 }
   0x8   : > { %p39_p0 = scmp.ge.s32.totalorder %s37_s17, 2  ;;  %p79_p1 = scmp.ne.s32.totalorder %s622_s11, %s618_s10 }
   0x9   : > { %p80_p2 = scmp.eq.s32.totalorder %s634_s14, 0  ;;  %p85_p3 = scmp.ne.s32.totalorder %s618_s10, %s614_s9 }
   0xa   : > { %s817_s17 = smov (%p39_p0, %s37_s17), 0  ;;  %p86_p5 = scmp.eq.s32.totalorder %s437_s15, 0 }
   0xb   : > { %p698_p4 = por %p80_p2, %p79_p1  ;;  %s67_s20 = ssub.s32 %s630_s13, %s817_s17 }
   0xc   : > { %p113_p6 = scmp.eq.s32.totalorder %s437_s15, 1  ;;  %p70_p7 = scmp.eq.s32.totalorder %s67_s20, 0 }
   0xd   : > { %p704_p8 = por %p86_p5, %p85_p3  ;;  %p119_p10 = scmp.eq.s32.totalorder %s438_s16, 1 }
   0xe   : > { %p708_p9 = por %p113_p6, %p79_p1  ;;  %p467_p13 = scmp.lt.s32.totalorder %s634_s14, 2 }
   0xf   : > { %s713_s23 = scalar_select %p70_p7, %s622_s11, %s72_s18  }
  0x10   : > { %p715_p11 = por %p119_p10, %p85_p3  ;;  %s146_s25 = sand.u32 1, %s622_s11  }
  0x11   : > { %s442_s26 = sshll.u32 %s146_s25, 3  ;;  %s453_s27 = sshll.u32 %s630_s13, 7 }
  0x12   : > { %s807_s24 = scalar_select %p715_p11, 1, 0 }
  0x13   : > { %s158_s30 = scalar_lea.hbm %s802_s1, %s453_s27  ;;  %s150_s3 = scalar_lea.vmem [#allocation2], %s442_s26 }
  0x14   : > { %s160_s4 = sshll.u32 %s150_s3, 4  ;;  %p728_p0 = pnand %p467_p13, %p698_p4  ;;  %s161_s4 = int_to_ptr.vmem [resolvable:$true] %s160_s4 }
  0x15   : > { %p445_p1 = scmp.ge.s32.totalorder %s634_s14, 1  ;;  %p165_p2 = scmp.lt.s32.totalorder %s634_s14, 3 }
  0x16   : > { %s147_s6 = scalar_lea.sflag [#allocation3], %s146_s25  ;;  %p528_p3 = pneg %p728_p0 }
  0x17   : > { %s539_s7 = scalar_lea.vmem %s161_s4, 128  ;;  %s636_s8 = smov [#allocation2]  }
  0x18   : > { %p540_p5 = scmp.ne.s32.totalorder %s161_s4, %s539_s7  ;;  %s544_s15 = sshll.u32 %s636_s8, 4  ;;  %s545_s15 = int_to_ptr.vmem [resolvable:$false] %s544_s15 }
  0x19   : > { %s546_s16 = scalar_lea.vmem %s545_s15, 256  ;;  %p547_p10 = scmp.lt.s32.totalorder %s161_s4, %s545_s15 }
  0x1a   : > { %p542_p6 = pnand %p540_p5, %p528_p3  ;;  %p548_p12 = scmp.lt.s32.totalorder %s546_s16, %s539_s7 }
  0x1c   : > { %p543_p7 = pneg %p542_p6  ;;  %p549_p4 = por %p548_p12, %p547_p10 }
  0x1e   : > { %p550_p13 = pnand %p549_p4, %p543_p7 }
  0x20   : > { %553 = shalt.err (!%p550_p13)
}
  0x21   : > { %462 = dma.hbm_to_vmem [thread:$0]  (!%p728_p0), %s158_s30, 128, %s161_s4, %s147_s6  }
  0x22   : > { %p166_p11 = pnand %p445_p1, %p165_p2 }
  0x23   : > { %s743_s18 = sand.u32 (!%p166_p11), 1, %s618_s10  }
  0x24   : > { %169 = sbr.rel (%p166_p11) target bundleno = 194 (0xc2), region = 28  ;;  %s446_s19 = sshll.u32 (!%p166_p11), %s743_s18, 3 }
  0x25   : > { %s172_s20 = scalar_lea.sflag (!%p166_p11), [#allocation3], %s743_s18  ;;  %s175_s25 = scalar_lea.vmem (!%p166_p11), [#allocation2], %s446_s19 }
  0x29   : > { %605 = dma.done.wait (%p704_p8), %s172_s20, 128  }
  0x2a   : > { %607 = vsyncadd (%p704_p8), %s172_s20, 4294967168  ;;  %v637_v0 = vmov 0   ;;  %v638_v1 = vmov 2   ;;  %v206_v2 = vld [vmem:[%s801_s0] sm:$0xff]  ;;  %v639_v3 = vmov 1   ;;  %v640_v4 = vmov 3  }
  0x2b   : > { %521 = vset.pattern.permute.xlu0 %v637_v0  ;;  %523 = vset.pattern.permute.xlu1 %v638_v1  ;;  %v214_v5 = vlaneseq  ;;  %v207_v11 = vld [vmem:[%s175_s25] sm:$0xff]  ;;  %s447_s21 = sshll.u32 %s743_s18, 4  ;;  %s454_s28 = sshll.u32 %s626_s12, 8 }
  0x2c   : > { %210 = vperm.xlu0 %521, %v206_v2   ;;  %261 = vperm.xlu1 %523, %v206_v2   ;;  %s199_s29 = scalar_lea.vmem [#allocation5], %s447_s21  ;;  %s759_s5 = scalar_lea.hbm %s803_s2, %s454_s28 }
  0x2d   : > { %v215_v6 = vshrl.u32 %v214_v5, 7  ;;  %s333_s30 = sshll.u32 %s199_s29, 4  ;;  %s315_s6 = scalar_lea.sflag [#allocation4], %s743_s18  ;;  %s334_s30 = int_to_ptr.vmem [resolvable:$true] %s333_s30 }
  0x2e   : > { %s554_s7 = scalar_lea.vmem %s334_s30, 256  ;;  %s641_s12 = smov [#allocation5]  }
  0x2f   : > { %v216_v7 = vsub.s32 0, %v215_v6  ;;  %v220_v8 = vsub.s32 4, %v215_v6  ;;  %v240_v9 = vsub.s32 1, %v215_v6  ;;  %v244_v10 = vsub.s32 5, %v215_v6  ;;  %p555_p8 = scmp.ne.s32.totalorder %s334_s30, %s554_s7  ;;  %s558_s8 = sshll.u32 %s641_s12, 4  ;;  %s559_s8 = int_to_ptr.vmem [resolvable:$false] %s558_s8 }
  0x30   : > { %522 = vset.pattern.permute.xlu0 %v639_v3  ;;  %524 = vset.pattern.permute.xlu1 %v640_v4  ;;  %v266_v12 = vsub.s32 2, %v215_v6  ;;  %v270_v13 = vsub.s32 6, %v215_v6  ;;  %v292_v14 = vsub.s32 3, %v215_v6  ;;  %v296_v15 = vsub.s32 7, %v215_v6  ;;  %s560_s15 = scalar_lea.vmem %s559_s8, 512  ;;  %p561_p0 = scmp.lt.s32.totalorder %s334_s30, %s559_s8 }
  0x31   : > { %235 = vperm.xlu0 %522, %v206_v2   ;;  %287 = vperm.xlu1 %524, %v206_v2   ;;  %v217_v16 = vrot.slane %v207_v11, %v216_v7  ;;  %v221_v17 = vrot.slane %v207_v11, %v220_v8  ;;  %v241_v18 = vrot.slane %v207_v11, %v240_v9  ;;  %p556_p11 = pnand %p555_p8, %p708_p9  ;;  %p562_p1 = scmp.lt.s32.totalorder %s560_s15, %s554_s7 }
  0x32   : > { %v245_v19 = vrot.slane %v207_v11, %v244_v10  ;;  %v267_v20 = vrot.slane %v207_v11, %v266_v12  ;;  %v271_v21 = vrot.slane %v207_v11, %v270_v13  ;;  %v293_v24 = vrot.slane %v207_v11, %v292_v14 }
  0x33   : > { %v297_v25 = vrot.slane %v207_v11, %v296_v15  ;;  %v227_v26 = vrot.slane %v217_v16, %v216_v7  ;;  %v231_v27 = vrot.slane %v221_v17, %v216_v7  ;;  %v251_v28 = vrot.slane %v241_v18, %v240_v9  ;;  %p557_p12 = pneg %p556_p11  ;;  %p563_p2 = por %p562_p1, %p561_p0 }
  0x34   : > { %v255_v29 = vrot.slane %v245_v19, %v240_v9  ;;  %v277_v30 = vrot.slane %v267_v20, %v266_v12  ;;  %v281_v31 = vrot.slane %v271_v21, %v266_v12  ;;  %v303_v32 = vrot.slane %v293_v24, %v292_v14 }
  0x35   : > { %525 = vset.pattern.permute.xlu0 %v640_v4  ;;  %v307_v33 = vrot.slane %v297_v25, %v292_v14  ;;  %p564_p3 = pnand %p563_p2, %p557_p12 }
  0xa7   : > { %v211_v22 = vpop.permute.xlu0 %210  ;;  %v262_v23 = vpop.permute.xlu1 %261 }
  0xa8   : > { %v232_v36 = vmul.f32 %v227_v26, %v211_v22  ;;  %v233_v37 = vmul.f32 %v231_v27, %v211_v22  ;;  %v282_v40 = vmul.f32 %v277_v30, %v262_v23  ;;  %v283_v41 = vmul.f32 %v281_v31, %v262_v23 }
  0xac   : > { %v236_v34 = vpop.permute.xlu0 %235  ;;  %v288_v35 = vpop.permute.xlu1 %287 }
  0xad   : > { %v256_v38 = vmul.f32 %v251_v28, %v236_v34  ;;  %v257_v39 = vmul.f32 %v255_v29, %v236_v34  ;;  %v308_v44 = vmul.f32 %v303_v32, %v288_v35  ;;  %v309_v45 = vmul.f32 %v307_v33, %v288_v35 }
  0xaf   : > { %v258_v42 = vadd.f32 %v256_v38, %v232_v36  ;;  %v259_v43 = vadd.f32 %v257_v39, %v233_v37 }
  0xb1   : > { %v284_v46 = vadd.f32 %v282_v40, %v258_v42  ;;  %v285_v47 = vadd.f32 %v283_v41, %v259_v43 }
  0xb3   : > { %v310_v48 = vadd.f32 %v308_v44, %v284_v46  ;;  %v311_v49 = vadd.f32 %v309_v45, %v285_v47 }
  0xb5   : > { %312 = vst [vmem:[%s199_s29] sm:$0xff] %v310_v48  ;;  %313 = vst [vmem:[%s199_s29 + $0x8] sm:$0xff] %v311_v49 }
  0xb6   : > { %567 = shalt.err (!%p564_p3)
}
  0xb7   : > { %s568_s16 = scalar_lea.hbm %s759_s5, 256  ;;  %s572_s20 = scalar_lea.hbm %s803_s2, 512 }
  0xb8   : > { %p569_p5 = scmp.ne.s32.totalorder %s759_s5, %s568_s16  ;;  %p573_p10 = scmp.lt.s32.totalorder %s759_s5, %s803_s2 }
  0xb9   : > { %p574_p4 = scmp.lt.s32.totalorder %s572_s20, %s568_s16 }
  0xba   : > { %p570_p6 = pnand %p569_p5, %p708_p9 }
  0xbb   : > { %p575_p13 = por %p574_p4, %p573_p10 }
  0xbc   : > { %p571_p7 = pneg %p570_p6 }
  0xbe   : > { %p576_p8 = pnand %p575_p13, %p571_p7 }
  0xc0   : > { %579 = shalt.err (!%p576_p8)
}
  0xc1   : > { %457 = dma.vmem_to_hbm [thread:$0]  (%p708_p9), %s334_s30, 256, %s759_s5, %s315_s6  }
  0xc2 PF: > { %s345_s27 = sand.u32 1, %s614_s9   ;;  %p809_p11 = scmp.ne.s32.totalorder %s807_s24, 0 }
  0xc3   : > { %p810_p12 = scmp.ge.s32.totalorder %s634_s14, 2  ;;  %s346_s21 = scalar_lea.sflag [#allocation4], %s345_s27 }
  0xc5   : > { %p464_p0 = pnand %p810_p12, %p809_p11 }
  0xc7   : > { %p465_p1 = pneg %p464_p0 }
  0xc9   : > { %609 = dma.done.wait (%p465_p1), %s346_s21, 256  }
  0xca   : > { %611 = vsyncadd (%p465_p1), %s346_s21, 4294967040  ;;  %s18_s14 = sadd.s32 1, %s634_s14   ;;  %s811_s9 = smov %s618_s10 }
  0xcb   : > { %p15_p2 = scmp.ge.s32.totalorder %s18_s14, 4   ;;  %s812_s10 = smov %s622_s11 }
  0xcc   : > { %s813_s11 = smov %s713_s23  ;;  %s814_s12 = smov %s630_s13 }
  0xcd   : > { %s815_s13 = smov %s817_s17  ;;  %17 = sbr.rel (!%p15_p2) target bundleno = 6 (0x6), region = 76 }
  0xd2   :  { %351 = vsyncpa [#allocation3], 1 }
  0xd3   :  { %353 = vsyncpa [#allocation3 + $0x1], 1 }
  0xd4   :  { %354 = vsyncpa [#allocation4], 1 }
  0xd5   :  { %356 = vsyncpa [#allocation4 + $0x1], 1 }

</bundles_post_ra>
